<compile_context>
chip_gen: v6e
topology: v6e:2x2x1
jax: 0.10.0
libtpu: 0.0.40
codegen_flags: <defaults>
</compile_context>

<pallas_src>
import functools
import math

import jax
import jax.numpy as jnp
from jax import lax
from jax.experimental import pallas as pl
from jax.experimental.pallas import tpu as pltpu


_SUPER_ROWS = 256           # target rows (G*N) per block-diagonal MXU super-tile
_MAX_SUPER_PER_STEP = 8     # bound on the static in-kernel unroll over super-tiles


def _conv_layer_kernel(node_ref, adj_ref, mask_ref, w_ref, b_ref, out_ref, *,
                       n_nodes, group):
    # node_ref: (Bt*N, F)   adj_ref: (Bt*N, N)   mask_ref: (G*N, G*N)
    # w_ref: (F, F) torch (out, in) layout       b_ref: (1, F)
    # out_ref: (Bt*N, F)
    rows, _feat = node_ref.shape
    N, G = n_nodes, group
    GN = G * N
    n_super = rows // GN

    # ---- Linear: x @ W.T + b as one (Bt*N, F) MXU matmul (f32 accumulate) ---
    h = lax.dot_general(
        node_ref[...], w_ref[...],
        dimension_numbers=(((1,), (1,)), ((), ())),   # contract F_in with W's "in" dim
        preferred_element_type=jnp.float32)
    h = (h + b_ref[...]).astype(node_ref.dtype)       # native dtype into the 2nd matmul

    # ---- degrees (normalisation happens AFTER aggregation) ------------------
    adj = adj_ref[...]
    deg = jnp.sum(adj.astype(jnp.float32), axis=-1, keepdims=True)    # (Bt*N, 1)
    # exact reciprocal keeps 1e-5 parity; approx=True (EUP slot) needs ~1e-3 tol
    inv_deg = pl.reciprocal(deg, approx=False)

    mask = mask_ref[...]

    # ---- block-diagonal packed aggregation ----------------------------------
    for s in range(n_super):                    # small static unroll (<= _MAX_SUPER_PER_STEP)
        r0 = s * GN
        adj_sup = adj[r0:r0 + GN, :]            # (GN, N), native dtype
        h_sup = h[r0:r0 + GN, :]                # (GN, F), native dtype
        if G > 1:
            adj_wide = jnp.concatenate([adj_sup] * G, axis=-1)   # (GN, GN)
            bd = adj_wide * mask                # zero out off-diagonal graph blocks
        else:
            bd = adj_sup                        # GN == N: already "block diagonal"
        agg = jnp.dot(bd, h_sup, preferred_element_type=jnp.float32)  # (GN, F) f32
        out = jnp.maximum(agg * inv_deg[r0:r0 + GN, :], 0.0)
        out_ref[r0:r0 + GN, :] = out.astype(out_ref.dtype)


def _vmem_capacity_bytes():
    try:
        info = pltpu.get_tpu_info()
        cap = getattr(info, "vmem_capacity_bytes", None)
        if cap:
            return int(cap)
    except Exception:
        pass
    return 64 << 20      # conservative default (v7x per-TensorCore VMEM)


def _choose_batch_tile(B, N, F, itemsize, tile_budget, batch_tile):
    g_max = max(1, _SUPER_ROWS // N)                   # graphs per block-diag super-tile
    per_graph = (2 * N * F + N * N) * itemsize * 2     # node + out + adj, double-buffered
    bt = max(1, tile_budget // per_graph)              # VMEM-derived upper bound
    bt = min(bt, g_max * _MAX_SUPER_PER_STEP)          # bound the in-kernel unroll
    if B > 1:
        bt = min(bt, -(-B // 2))                       # keep >= 2 grid steps (v7x dual-TC)
    if batch_tile is not None:
        bt = min(bt, max(1, int(batch_tile)))
    G = max(1, min(bt, g_max))
    m = 8 // math.gcd(N, 8)                            # (bt*N) % 8 == 0 (BlockSpec rule)
    unit = G * m // math.gcd(G, m)                     # lcm(G, m)
    bt = max(unit, (bt // unit) * unit)
    return bt, G


def convolution_layer(node_mat, adj_mat, weight, bias, *, batch_tile=None):
    """Graph conv forward.

    node_mat: (B, N, F); adj_mat: (B, N, N);
    weight:   (F, F) in torch nn.Linear layout (out_features, in_features);
    bias:     (F,)
    """
    B, N, F = node_mat.shape
    itemsize = jnp.dtype(node_mat.dtype).itemsize

    vmem_cap = _vmem_capacity_bytes()
    if vmem_cap >= (128 << 20):                        # v5e / v6e (128 MiB VMEM)
        tile_budget, vmem_limit = 96 << 20, 112 << 20
    else:                                              # v7x (64 MiB per TC)
        tile_budget, vmem_limit = 40 << 20, 48 << 20

    Bt, G = _choose_batch_tile(B, N, F, itemsize, tile_budget, batch_tile)
    num_tiles = -(-B // Bt)                            # ceil(B / Bt)
    Bp = num_tiles * Bt
    GN = G * N

    # Pad batch so the grid divides evenly; padded graphs get identity
    # adjacency (degree 1) so no inf/NaN; their outputs are sliced off below.
    if Bp != B:
        pad = Bp - B
        node_mat = jnp.concatenate(
            [node_mat, jnp.zeros((pad, N, F), node_mat.dtype)], axis=0)
        eye = jnp.broadcast_to(jnp.eye(N, dtype=adj_mat.dtype), (pad, N, N))
        adj_mat = jnp.concatenate([adj_mat, eye], axis=0)

    # 2D slabs: free row-major reshapes here, none inside the kernel.
    node2d = node_mat.reshape(Bp * N, F)
    adj2d = adj_mat.reshape(Bp * N, N)
    bias2 = bias.reshape(1, F)

    # Block-id mask for block-diagonal packing (constant; same dtype as adj so
    # the MXU operand stays in its native, possibly narrow, dtype).
    gid = jnp.arange(GN, dtype=jnp.int32) // N
    mask = (gid[:, None] == gid[None, :]).astype(adj_mat.dtype)    # (GN, GN)

    kernel = functools.partial(_conv_layer_kernel, n_nodes=N, group=G)

    out2d = pl.pallas_call(
        kernel,
        out_shape=jax.ShapeDtypeStruct((Bp * N, F), node_mat.dtype),
        grid=(num_tiles,),
        in_specs=[
            pl.BlockSpec((Bt * N, F), lambda b: (b, 0)),
            pl.BlockSpec((Bt * N, N), lambda b: (b, 0)),
            pl.BlockSpec((GN, GN), lambda b: (0, 0)),
            pl.BlockSpec((F, F), lambda b: (0, 0)),
            pl.BlockSpec((1, F), lambda b: (0, 0)),
        ],
        out_specs=pl.BlockSpec((Bt * N, F), lambda b: (b, 0)),
        compiler_params=pltpu.CompilerParams(
            dimension_semantics=("parallel",),    # batch tiles shard across TCs (v7x)
            vmem_limit_bytes=vmem_limit,
        ),
    )(node2d, adj2d, mask, weight, bias2)

    out = out2d.reshape(Bp, N, F)
    return out[:B] if Bp != B else out


def _reference(node_mat, adj_mat, weight, bias):
    n_neighbors = adj_mat.sum(axis=-1, keepdims=True)
    h = jnp.einsum("bnf,gf->bng", node_mat, weight) + bias
    h = jnp.einsum("bnm,bmf->bnf", adj_mat, h)
    h = h / n_neighbors
    return jnp.maximum(h, 0.0)


if __name__ == "__main__":
    # B=13 is intentionally not divisible by the auto-chosen batch tile so the
    # padding path is exercised; N=16, F=32 keep shapes small.
    B, N, F = 13, 16, 32

    key = jax.random.PRNGKey(0)
    k_node, k_adj, k_w, k_b = jax.random.split(key, 4)

    node_mat = jax.random.normal(k_node, (B, N, F), dtype=jnp.float32)

    # Symmetric 0/1 adjacency with self-loops (guarantees degree >= 1).
    raw = jax.random.uniform(k_adj, (B, N, N))
    adj = (raw + jnp.swapaxes(raw, -1, -2) > 1.0).astype(jnp.float32)
    adj = jnp.maximum(adj, jnp.eye(N, dtype=jnp.float32)[None, :, :])

    # Deterministic nn.Linear(F, F) parameters, torch layout: weight (out, in).
    bound = 1.0 / jnp.sqrt(F)
    weight = jax.random.uniform(k_w, (F, F), minval=-bound, maxval=bound,
                                dtype=jnp.float32)
    bias = jax.random.uniform(k_b, (F,), minval=-bound, maxval=bound,
                              dtype=jnp.float32)

    # ---- f32 path: strict parity with the PyTorch reference -----------------
    out = jax.block_until_ready(convolution_layer(node_mat, adj, weight, bias))
    ref = _reference(node_mat, adj, weight, bias)
    assert out.shape == (B, N, F)
    assert jnp.allclose(out, ref, atol=1e-5, rtol=1e-5), "f32 mismatch vs reference"

    # ---- bf16 path: narrow-dtype operands straight into the MXU -------------
    node_bf = node_mat.astype(jnp.bfloat16)
    adj_bf = adj.astype(jnp.bfloat16)
    w_bf = weight.astype(jnp.bfloat16)
    b_bf = bias.astype(jnp.bfloat16)
    out_bf = jax.block_until_ready(convolution_layer(node_bf, adj_bf, w_bf, b_bf))
    ref_bf = _reference(node_bf.astype(jnp.float32), adj_bf.astype(jnp.float32),
                        w_bf.astype(jnp.float32), b_bf.astype(jnp.float32))
    assert out_bf.shape == (B, N, F)
    assert jnp.allclose(out_bf.astype(jnp.float32), ref_bf, atol=5e-2, rtol=5e-2), \
        "bf16 mismatch vs reference"

    print("KERNEL_OK")
</pallas_src>

<mosaic_0001>
module attributes {stable_mosaic.version = 11 : i64} {
  func.func @_conv_layer_kernel(%arg0: i32, %arg1: memref<112x32xf32, #tpu.memory_space<vmem>>, %arg2: memref<112x16xf32, #tpu.memory_space<vmem>>, %arg3: memref<112x112xf32, #tpu.memory_space<vmem>>, %arg4: memref<32x32xf32, #tpu.memory_space<vmem>>, %arg5: memref<1x32xf32, #tpu.memory_space<vmem>>, %arg6: memref<112x32xf32, #tpu.memory_space<vmem>>) attributes {dimension_semantics = [#tpu.dimension_semantics<parallel>], iteration_bounds = array<i64: 2>, scalar_prefetch = 0 : i64, scratch_operands = 0 : i64, tpu.core_type = #tpu.core_type<tc>, window_params = [{transform_indices = @transform_0, window_bounds = array<i64: 112, 32>}, {transform_indices = @transform_1, window_bounds = array<i64: 112, 16>}, {pipeline_mode = #tpu.pipeline_mode<synchronous>, transform_indices = @transform_2, window_bounds = array<i64: 112, 112>}, {pipeline_mode = #tpu.pipeline_mode<synchronous>, transform_indices = @transform_3, window_bounds = array<i64: 32, 32>}, {pipeline_mode = #tpu.pipeline_mode<synchronous>, transform_indices = @transform_4, window_bounds = array<i64: 1, 32>}, {transform_indices = @transform_5, window_bounds = array<i64: 112, 32>}]} {
    %c0 = arith.constant 0 : index
    %c0_0 = arith.constant 0 : index
    %0 = vector.load %arg1[%c0, %c0_0] : memref<112x32xf32, #tpu.memory_space<vmem>>, vector<112x32xf32>
    %c0_1 = arith.constant 0 : index
    %c0_2 = arith.constant 0 : index
    %1 = vector.load %arg4[%c0_1, %c0_2] : memref<32x32xf32, #tpu.memory_space<vmem>>, vector<32x32xf32>
    %cst = arith.constant dense<0.000000e+00> : vector<112x32xf32>
    %2 = tpu.matmul %0, %1, %cst {dimension_numbers = #tpu.dot_dimension_numbers<[1], [1], [0], [0], [0, 0, 1, 0], [], []>} : vector<112x32xf32>, vector<32x32xf32>, vector<112x32xf32> -> vector<112x32xf32>
    %c0_3 = arith.constant 0 : index
    %c0_4 = arith.constant 0 : index
    %3 = vector.load %arg5[%c0_3, %c0_4] : memref<1x32xf32, #tpu.memory_space<vmem>>, vector<1x32xf32>
    %4 = vector.broadcast %3 : vector<1x32xf32> to vector<112x32xf32>
    %5 = arith.addf %2, %4 : vector<112x32xf32>
    %c0_5 = arith.constant 0 : index
    %c0_6 = arith.constant 0 : index
    %6 = vector.load %arg2[%c0_5, %c0_6] : memref<112x16xf32, #tpu.memory_space<vmem>>, vector<112x16xf32>
    %cst_7 = arith.constant dense<0.000000e+00> : vector<112xf32>
    %7 = vector.multi_reduction <add>, %6, %cst_7 [1] : vector<112x16xf32> to vector<112xf32>
    %8 = vector.shape_cast %7 : vector<112xf32> to vector<112x1xf32>
    %9 = tpu.reciprocal %8 : vector<112x1xf32> -> vector<112x1xf32>
    %c0_8 = arith.constant 0 : index
    %c0_9 = arith.constant 0 : index
    %10 = vector.load %arg3[%c0_8, %c0_9] : memref<112x112xf32, #tpu.memory_space<vmem>>, vector<112x112xf32>
    %11 = tpu.concatenate %6, %6, %6, %6, %6, %6, %6 in 1 : vector<112x16xf32>, vector<112x16xf32>, vector<112x16xf32>, vector<112x16xf32>, vector<112x16xf32>, vector<112x16xf32>, vector<112x16xf32> -> vector<112x112xf32>
    %12 = arith.mulf %11, %10 : vector<112x112xf32>
    %cst_10 = arith.constant dense<0.000000e+00> : vector<112x32xf32>
    %13 = tpu.matmul %12, %5, %cst_10 {dimension_numbers = #tpu.dot_dimension_numbers<[1], [0], [0], [1], [0, 0, 1, 1], [], []>} : vector<112x112xf32>, vector<112x32xf32>, vector<112x32xf32> -> vector<112x32xf32>
    %14 = vector.broadcast %9 : vector<112x1xf32> to vector<112x32xf32>
    %15 = arith.mulf %13, %14 : vector<112x32xf32>
    %cst_11 = arith.constant 0.000000e+00 : f32
    %16 = vector.broadcast %cst_11 : f32 to vector<112x32xf32>
    %17 = arith.maximumf %15, %16 : vector<112x32xf32>
    %c0_12 = arith.constant 0 : index
    %c0_13 = arith.constant 0 : index
    %18 = vector.load %arg6[%c0_12, %c0_13] : memref<112x32xf32, #tpu.memory_space<vmem>>, vector<112x32xf32>
    tpu.vector_store %arg6[%c0_12, %c0_13], %17 {strides = array<i32>} : memref<112x32xf32, #tpu.memory_space<vmem>>, vector<112x32xf32>,
    return
  }
  func.func @transform_0(%arg0: i32) -> (i32, i32) {
    %c0_i32 = arith.constant 0 : i32
    %c0_i32_0 = arith.constant 0 : i32
    return %arg0, %c0_i32 : i32, i32
  }
  func.func @transform_1(%arg0: i32) -> (i32, i32) {
    %c0_i32 = arith.constant 0 : i32
    %c0_i32_0 = arith.constant 0 : i32
    return %arg0, %c0_i32 : i32, i32
  }
  func.func @transform_2(%arg0: i32) -> (i32, i32) {
    %c0_i32 = arith.constant 0 : i32
    %c0_i32_0 = arith.constant 0 : i32
    %c0_i32_1 = arith.constant 0 : i32
    return %c0_i32, %c0_i32_0 : i32, i32
  }
  func.func @transform_3(%arg0: i32) -> (i32, i32) {
    %c0_i32 = arith.constant 0 : i32
    %c0_i32_0 = arith.constant 0 : i32
    %c0_i32_1 = arith.constant 0 : i32
    return %c0_i32, %c0_i32_0 : i32, i32
  }
  func.func @transform_4(%arg0: i32) -> (i32, i32) {
    %c0_i32 = arith.constant 0 : i32
    %c0_i32_0 = arith.constant 0 : i32
    %c0_i32_1 = arith.constant 0 : i32
    return %c0_i32, %c0_i32_0 : i32, i32
  }
  func.func @transform_5(%arg0: i32) -> (i32, i32) {
    %c0_i32 = arith.constant 0 : i32
    %c0_i32_0 = arith.constant 0 : i32
    return %arg0, %c0_i32 : i32, i32
  }
}

</mosaic_0001>

<bundles_post_ra>
// kernel: tpu_custom_call.1
= control target key start
LH: loop header
LB: loop body
LE: loop exit
PB: predicated region body
PF: predicated region fallthrough
CT: control target
= control target key end

     0   :  { %s1487_s18 = smov 0   ;;  %s2131_s0 = inlined_call_operand.vmem [shape: f32[224,32], index: 0, kind: input, shape index: {}]   ;;  %s2132_s1 = inlined_call_operand.vmem [shape: f32[224,16], index: 1, kind: input, shape index: {}]   ;;  %s2133_s2 = inlined_call_operand.vmem [shape: f32[112,112], index: 2, kind: input, shape index: {}]   ;;  %s2134_s3 = inlined_call_operand.vmem [shape: f32[32,32], index: 3, kind: input, shape index: {}]   ;;  %s2135_s4 = inlined_call_operand.vmem [shape: f32[1,32], index: 4, kind: input, shape index: {}]   ;;  %s2136_s5 = inlined_call_operand.vmem [shape: f32[224,32], index: 5, kind: output, shape index: {}]  }
   0x1 LB: > { %s1206_s19 = sadd.s32 4294967295, %s1449_s18   ;;  %p1210_p0 = scmp.ge.s32.totalorder %s1449_s18, 1  ;;  %s1449_s18 = sphi %s1487_s18, %s15_s18  }
   0x2   : > { %p199_p1 = scmp.lt.s32.totalorder %s1449_s18, 3 }
   0x4   : > { %p200_p2 = pnand %p1210_p0, %p199_p1 }
   0x5   : > { %s232_s24 = smul.u32 (!%p200_p2), 14, %s1206_s19  ;;  %s1451_s11 = smov (!%p200_p2), 32  }
   0x6   : > { %203 = sbr.rel (%p200_p2) target bundleno = 497 (0x1f1), region = 40  ;;  %s1452_s12 = smov (!%p200_p2), 16  }
   0x7   : > { %p233_p3 = scmp.lt.s32.totalorder (!%p200_p2), %s232_s24, 27  ;;  %s1453_s13 = smov (!%p200_p2), 48  }
   0x8   : > { %s1454_s14 = smov (!%p200_p2), 64   ;;  %s1455_s15 = smov (!%p200_p2), 80  }
   0x9   : > { %s1456_s16 = smov (!%p200_p2), 96  }
   0xb   : > { %v267_v0 = vld [vmem:[%s2134_s3 + $0x18] sm:$0xff]  ;;  %vm275_vm0 = vcmask 261120   ;;  %v266_v1 = vld [vmem:[%s2134_s3 + $0x10] sm:$0xff]  ;;  %v265_v2 = vld [vmem:[%s2134_s3 + $0x8] sm:$0xff]  ;;  %s2138_s24 = smov (!%p233_p3, %s232_s24), 27  ;;  %vm479_vm1 = vcmask 130048  }
   0xc   : > { %1295 = vmatprep.subr.msk.mxu0 %vm275_vm0, %v267_v0  ;;  %s1508_s27 = sshll.u32 %s2138_s24, 3  ;;  %v264_v4 = vld [vmem:[%s2134_s3] sm:$0xff]  ;;  %vm844_vm2 = vcmask 392192   ;;  %vm859_vm3 = vcmask 523264   ;;  %vm874_vm4 = vcmask 654336   ;;  %vm889_vm5 = vcmask 785408  }
   0xd   : > { %1296 = vmatpush3.xpose.msk.msra.mxu0 %vm275_vm0, %v267_v0  ;;  %s1515_s30 = scalar_lea.vmem %s2132_s1, %s1508_s27  ;;  %s1521_s8 = scalar_lea.vmem %s2131_s0, %s1508_s27  ;;  %v538_v54 = vld [vmem:[%s2133_s2 + $0x10] sm:$0xff]  ;;  %vm918_vm6 = vcmask 916480  }
   0xe   : > { %1297 = vmatprep.subr.msk.mxu0 %vm275_vm0, %v266_v1  ;;  %v1524_v3 = vld [vmem:[%s1515_s30 + $0x10] sm:$0xff]  ;;  %v250_v5 = vld [vmem:[%s1521_s8] sm:$0xff]  ;;  %v1536_v6 = vld [vmem:[%s1515_s30 + $0x18] sm:$0xff]  ;;  %s2098_s28 = scalar_lea.vmem %s2136_s5, %s1508_s27 }
   0xf   : > { %610 = vrot.lane.b32.xlu1 %v1524_v3, %s1451_s11  ;;  %568 = vrot.lane.b32.xlu0 %v1524_v3, %s1452_s12  ;;  %v251_v7 = vld [vmem:[%s1521_s8 + $0x8] sm:$0xff]  ;;  %v252_v8 = vld [vmem:[%s1521_s8 + $0x10] sm:$0xff] }
  0x10   : > { %1303 = vmatprep.mubr.msk.f32.mxu0 %vm275_vm0, %v250_v5  ;;  %v1553_v9 = vld [vmem:[%s1515_s30 + $0x20] sm:$0xff]  ;;  %v253_v10 = vld [vmem:[%s1521_s8 + $0x18] sm:$0xff]  ;;  %v255_v12 = vld [vmem:[%s1521_s8 + $0x28] sm:$0xff] }
  0x11   : > { %1298 = vmatpush3.xpose.msk.msra.mxu0 %vm275_vm0, %v266_v1  ;;  %v254_v11 = vld [vmem:[%s1521_s8 + $0x20] sm:$0xff]  ;;  %v256_v13 = vld [vmem:[%s1521_s8 + $0x30] sm:$0xff]  ;;  %v1572_v14 = vld [vmem:[%s1515_s30 + $0x28] sm:$0xff] }
  0x12   : > { %1299 = vmatprep.subr.msk.mxu0 %vm275_vm0, %v265_v2  ;;  %v257_v15 = vld [vmem:[%s1521_s8 + $0x38] sm:$0xff]  ;;  %v258_v16 = vld [vmem:[%s1521_s8 + $0x40] sm:$0xff]  ;;  %v259_v17 = vld [vmem:[%s1521_s8 + $0x48] sm:$0xff] }
  0x13   : > { %612 = vrot.lane.b32.xlu1 %v1536_v6, %s1451_s11  ;;  %570 = vrot.lane.b32.xlu0 %v1536_v6, %s1452_s12  ;;  %v260_v18 = vld [vmem:[%s1521_s8 + $0x50] sm:$0xff]  ;;  %v261_v19 = vld [vmem:[%s1521_s8 + $0x58] sm:$0xff] }
  0x14   : > { %v262_v20 = vld [vmem:[%s1521_s8 + $0x60] sm:$0xff]  ;;  %v263_v21 = vld [vmem:[%s1521_s8 + $0x68] sm:$0xff]  ;;  %v1606_v22 = vld [vmem:[%s1515_s30 + $0x30] sm:$0xff] }
  0x15   : > { %1300 = vmatpush3.xpose.msk.msra.mxu0 %vm275_vm0, %v265_v2  ;;  %v1617_v23 = vld [vmem:[%s1515_s30 + $0x38] sm:$0xff]  ;;  %v1636_v24 = vld [vmem:[%s1515_s30 + $0x40] sm:$0xff]  ;;  %v1647_v25 = vld [vmem:[%s1515_s30 + $0x48] sm:$0xff] }
  0x16   : > { %1301 = vmatprep.subr.msk.mxu0 %vm275_vm0, %v264_v4  ;;  %v1666_v26 = vld [vmem:[%s1515_s30 + $0x50] sm:$0xff]  ;;  %v1677_v27 = vld [vmem:[%s1515_s30 + $0x58] sm:$0xff]  ;;  %v1696_v28 = vld [vmem:[%s1515_s30] sm:$0xff] }
  0x17   : > { %654 = vrot.lane.b32.xlu1 %v1536_v6, %s1453_s13  ;;  %652 = vrot.lane.b32.xlu0 %v1524_v3, %s1453_s13  ;;  %v1703_v29 = vld [vmem:[%s1515_s30 + $0x60] sm:$0xff]  ;;  %v1710_v30 = vld [vmem:[%s1515_s30 + $0x8] sm:$0xff] }
  0x18   : > { %v1717_v33 = vld [vmem:[%s1515_s30 + $0x68] sm:$0xff] }
  0x19   : > { %1302 = vmatpush3.xpose.msk.msra.mxu0 %vm275_vm0, %v264_v4 }
  0x1b   : > { %572 = vrot.lane.b32.xlu1 %v1553_v9, %s1452_s12  ;;  %694 = vrot.lane.b32.xlu0 %v1524_v3, %s1454_s14 }
  0x1c   : > { %1304 = vmatmul.mubr.msk.f32.vlgmr.msra.gmra.mxu0 %vm275_vm0, %v251_v7 }
  0x1d   : > { %1306 = vmatprep.mubr.msk.f32.mxu0 %vm275_vm0, %v252_v8 }
  0x1f   : > { %736 = vrot.lane.b32.xlu1 %v1524_v3, %s1455_s15  ;;  %696 = vrot.lane.b32.xlu0 %v1536_v6, %s1454_s14 }
  0x20   : > { %1307 = vmatmul.mubr.msk.f32.gmra.mxu0 %vm275_vm0, %v253_v10 }
  0x21   : > { %1309 = vmatprep.mubr.msk.f32.mxu0 %vm275_vm0, %v254_v11 }
  0x23   : > { %614 = vrot.lane.b32.xlu1 %v1553_v9, %s1451_s11  ;;  %574 = vrot.lane.b32.xlu0 %v1572_v14, %s1452_s12 }
  0x24   : > { %1310 = vmatmul.mubr.msk.f32.gmra.mxu0 %vm275_vm0, %v255_v12 }
  0x25   : > { %1312 = vmatprep.mubr.msk.f32.mxu0 %vm275_vm0, %v256_v13 }
  0x27   : > { %778 = vrot.lane.b32.xlu1 %v1524_v3, %s1456_s16  ;;  %738 = vrot.lane.b32.xlu0 %v1536_v6, %s1455_s15 }
  0x28   : > { %1313 = vmatmul.mubr.msk.f32.gmra.mxu0 %vm275_vm0, %v257_v15 }
  0x29   : > { %1315 = vmatprep.mubr.msk.f32.mxu0 %vm275_vm0, %v258_v16 }
  0x2b   : > { %656 = vrot.lane.b32.xlu1 %v1553_v9, %s1453_s13  ;;  %616 = vrot.lane.b32.xlu0 %v1572_v14, %s1451_s11 }
  0x2c   : > { %1316 = vmatmul.mubr.msk.f32.gmra.mxu0 %vm275_vm0, %v259_v17 }
  0x2d   : > { %1318 = vmatprep.mubr.msk.f32.mxu0 %vm275_vm0, %v260_v18 }
  0x2f   : > { %658 = vrot.lane.b32.xlu1 %v1572_v14, %s1453_s13  ;;  %780 = vrot.lane.b32.xlu0 %v1536_v6, %s1456_s16 }
  0x30   : > { %1319 = vmatmul.mubr.msk.f32.gmra.mxu0 %vm275_vm0, %v261_v19 }
  0x31   : > { %1321 = vmatprep.mubr.msk.f32.mxu0 %vm275_vm0, %v262_v20 }
  0x33   : > { %576 = vrot.lane.b32.xlu1 %v1606_v22, %s1452_s12  ;;  %698 = vrot.lane.b32.xlu0 %v1553_v9, %s1454_s14 }
  0x34   : > { %1322 = vmatmul.mubr.msk.f32.gmra.mxu0 %vm275_vm0, %v263_v21 }
  0x37   : > { %740 = vrot.lane.b32.xlu1 %v1553_v9, %s1455_s15  ;;  %700 = vrot.lane.b32.xlu0 %v1572_v14, %s1454_s14 }
  0x3b   : > { %618 = vrot.lane.b32.xlu1 %v1606_v22, %s1451_s11  ;;  %578 = vrot.lane.b32.xlu0 %v1617_v23, %s1452_s12 }
  0x3f   : > { %782 = vrot.lane.b32.xlu1 %v1553_v9, %s1456_s16  ;;  %742 = vrot.lane.b32.xlu0 %v1572_v14, %s1455_s15 }
  0x43   : > { %660 = vrot.lane.b32.xlu1 %v1606_v22, %s1453_s13  ;;  %620 = vrot.lane.b32.xlu0 %v1617_v23, %s1451_s11 }
  0x47   : > { %662 = vrot.lane.b32.xlu1 %v1617_v23, %s1453_s13  ;;  %784 = vrot.lane.b32.xlu0 %v1572_v14, %s1456_s16 }
  0x4b   : > { %580 = vrot.lane.b32.xlu1 %v1636_v24, %s1452_s12  ;;  %702 = vrot.lane.b32.xlu0 %v1606_v22, %s1454_s14 }
  0x4f   : > { %744 = vrot.lane.b32.xlu1 %v1606_v22, %s1455_s15  ;;  %704 = vrot.lane.b32.xlu0 %v1617_v23, %s1454_s14 }
  0x53   : > { %622 = vrot.lane.b32.xlu1 %v1636_v24, %s1451_s11  ;;  %582 = vrot.lane.b32.xlu0 %v1647_v25, %s1452_s12 }
  0x57   : > { %786 = vrot.lane.b32.xlu1 %v1606_v22, %s1456_s16  ;;  %746 = vrot.lane.b32.xlu0 %v1617_v23, %s1455_s15 }
  0x5b   : > { %664 = vrot.lane.b32.xlu1 %v1636_v24, %s1453_s13  ;;  %624 = vrot.lane.b32.xlu0 %v1647_v25, %s1451_s11 }
  0x5f   : > { %666 = vrot.lane.b32.xlu1 %v1647_v25, %s1453_s13  ;;  %788 = vrot.lane.b32.xlu0 %v1617_v23, %s1456_s16 }
  0x63   : > { %584 = vrot.lane.b32.xlu1 %v1666_v26, %s1452_s12  ;;  %706 = vrot.lane.b32.xlu0 %v1636_v24, %s1454_s14 }
  0x67   : > { %748 = vrot.lane.b32.xlu1 %v1636_v24, %s1455_s15  ;;  %708 = vrot.lane.b32.xlu0 %v1647_v25, %s1454_s14 }
  0x6b   : > { %626 = vrot.lane.b32.xlu1 %v1666_v26, %s1451_s11  ;;  %586 = vrot.lane.b32.xlu0 %v1677_v27, %s1452_s12 }
  0x6f   : > { %790 = vrot.lane.b32.xlu1 %v1636_v24, %s1456_s16  ;;  %750 = vrot.lane.b32.xlu0 %v1647_v25, %s1455_s15 }
  0x73   : > { %668 = vrot.lane.b32.xlu1 %v1666_v26, %s1453_s13  ;;  %628 = vrot.lane.b32.xlu0 %v1677_v27, %s1451_s11 }
  0x77   : > { %670 = vrot.lane.b32.xlu1 %v1677_v27, %s1453_s13  ;;  %792 = vrot.lane.b32.xlu0 %v1647_v25, %s1456_s16 }
  0x7b   : > { %710 = vrot.lane.b32.xlu0 %v1666_v26, %s1454_s14  ;;  %564 = vrot.lane.b32.xlu1 %v1696_v28, %s1452_s12 }
  0x7f   : > { %588 = vrot.lane.b32.xlu0 %v1703_v29, %s1452_s12  ;;  %712 = vrot.lane.b32.xlu1 %v1677_v27, %s1454_s14 }
  0x81   : > { %v611_v31 = vpop.permute.xlu1 %610  ;;  %v569_v32 = vpop.permute.xlu0 %568 }
  0x82   : > { %v818_v46 = vsel %vm479_vm1, %v1524_v3, %v569_v32 }
  0x83   : > { %752 = vrot.lane.b32.xlu0 %v1666_v26, %s1455_s15  ;;  %566 = vrot.lane.b32.xlu1 %v1710_v30, %s1452_s12  ;;  %v832_v50 = vsel %vm275_vm0, %v818_v46, %v611_v31 }
  0x85   : > { %v613_v34 = vpop.permute.xlu1 %612  ;;  %v571_v35 = vpop.permute.xlu0 %570 }
  0x86   : > { %v819_v36 = vsel %vm479_vm1, %v1536_v6, %v571_v35 }
  0x87   : > { %590 = vrot.lane.b32.xlu0 %v1717_v33, %s1452_s12  ;;  %606 = vrot.lane.b32.xlu1 %v1696_v28, %s1451_s11  ;;  %v833_v37 = vsel %vm275_vm0, %v819_v36, %v613_v34 }
  0x89   : > { %v655_v38 = vpop.permute.xlu1 %654  ;;  %v653_v39 = vpop.permute.xlu0 %652 }
  0x8a   : > { %v848_v40 = vsel %vm844_vm2, %v833_v37, %v655_v38  ;;  %v847_v52 = vsel %vm844_vm2, %v832_v50, %v653_v39 }
  0x8b   : > { %630 = vrot.lane.b32.xlu0 %v1703_v29, %s1451_s11  ;;  %754 = vrot.lane.b32.xlu1 %v1677_v27, %s1455_s15 }
  0x8d   : > { %v573_v41 = vpop.permute.xlu1 %572  ;;  %v695_v42 = vpop.permute.xlu0 %694 }
  0x8e   : > { %v820_v47 = vsel %vm479_vm1, %v1553_v9, %v573_v41  ;;  %v862_v53 = vsel %vm859_vm3, %v847_v52, %v695_v42 }
  0x8f   : > { %794 = vrot.lane.b32.xlu0 %v1666_v26, %s1456_s16  ;;  %608 = vrot.lane.b32.xlu1 %v1710_v30, %s1451_s11 }
  0x91   : > { %v737_v43 = vpop.permute.xlu1 %736  ;;  %v697_v44 = vpop.permute.xlu0 %696 }
  0x92   : > { %v863_v45 = vsel %vm859_vm3, %v848_v40, %v697_v44  ;;  %v877_v55 = vsel %vm874_vm4, %v862_v53, %v737_v43 }
  0x93   : > { %632 = vrot.lane.b32.xlu0 %v1717_v33, %s1451_s11  ;;  %648 = vrot.lane.b32.xlu1 %v1696_v28, %s1453_s13 }
  0x95   : > { %v615_v48 = vpop.permute.xlu1 %614  ;;  %v575_v49 = vpop.permute.xlu0 %574 }
  0x96   : > { %v834_v51 = vsel %vm275_vm0, %v820_v47, %v615_v48  ;;  %v821_v61 = vsel %vm479_vm1, %v1572_v14, %v575_v49 }
  0x97   : > { %672 = vrot.lane.b32.xlu0 %v1703_v29, %s1453_s13  ;;  %796 = vrot.lane.b32.xlu1 %v1677_v27, %s1456_s16 }
  0x99   : > { %v779_v56 = vpop.permute.xlu1 %778  ;;  %v739_v57 = vpop.permute.xlu0 %738 }
  0x9a   : > { %v892_v58 = vsel %vm889_vm5, %v877_v55, %v779_v56  ;;  %v878_v59 = vsel %vm874_vm4, %v863_v45, %v739_v57 }
  0x9b   : > { %650 = vrot.lane.b32.xlu0 %v1710_v30, %s1453_s13  ;;  %674 = vrot.lane.b32.xlu1 %v1717_v33, %s1453_s13  ;;  %v906_v60 = vmul.f32 %v892_v58, %v538_v54 }
  0x9d   : > { %v657_v62 = vpop.permute.xlu1 %656  ;;  %1355 = vmatprep.mubr.msk.f32.mxu1 %vm918_vm6, %v906_v60  ;;  %v617_v63 = vpop.permute.xlu0 %616 }
  0x9e   : > { %v849_v0 = vsel %vm844_vm2, %v834_v51, %v657_v62  ;;  %v835_v1 = vsel %vm275_vm0, %v821_v61, %v617_v63 }
  0x9f   : > { %690 = vrot.lane.b32.xlu0 %v1696_v28, %s1454_s14  ;;  %714 = vrot.lane.b32.xlu1 %v1703_v29, %s1454_s14 }
  0xa1   : > { %v659_v2 = vpop.permute.xlu1 %658  ;;  %v781_v4 = vpop.permute.xlu0 %780 }
  0xa2   : > { %v850_v5 = vsel %vm844_vm2, %v835_v1, %v659_v2  ;;  %v1773_v7 = vsel %vm889_vm5, %v878_v59, %v781_v4 }
  0xa3   : > { %692 = vrot.lane.b32.xlu0 %v1710_v30, %s1454_s14  ;;  %716 = vrot.lane.b32.xlu1 %v1717_v33, %s1454_s14 }
  0xa5   : > { %v577_v8 = vpop.permute.xlu1 %576  ;;  %v699_v10 = vpop.permute.xlu0 %698 }
  0xa6   : > { %v864_v11 = vsel %vm859_vm3, %v849_v0, %v699_v10  ;;  %v822_v17 = vsel %vm479_vm1, %v1606_v22, %v577_v8  ;;  %v480_v0 = vsel %vm479_vm1, %v1696_v28, 0.0  ;;  %v486_v8 = vsel %vm479_vm1, %v1524_v3, 0.0 }
  0xa7   : > { %732 = vrot.lane.b32.xlu0 %v1696_v28, %s1455_s15  ;;  %756 = vrot.lane.b32.xlu1 %v1703_v29, %s1455_s15  ;;  %v483_v10 = vsel %vm479_vm1, %v1710_v30, 0.0 }
  0xa9   : > { %v741_v12 = vpop.permute.xlu1 %740  ;;  %v701_v13 = vpop.permute.xlu0 %700 }
  0xaa   : > { %v879_v15 = vsel %vm874_vm4, %v864_v11, %v741_v12  ;;  %v865_v16 = vsel %vm859_vm3, %v850_v5, %v701_v13  ;;  %v489_v13 = vsel %vm479_vm1, %v1536_v6, 0.0  ;;  %v498_v6 = vsel %vm479_vm1, %v1606_v22, 0.0 }
  0xab   : > { %734 = vrot.lane.b32.xlu0 %v1710_v30, %s1455_s15  ;;  %758 = vrot.lane.b32.xlu1 %v1717_v33, %s1455_s15 }
  0xad   : > { %v619_v18 = vpop.permute.xlu1 %618  ;;  %v579_v19 = vpop.permute.xlu0 %578 }
  0xae   : > { %v836_v20 = vsel %vm275_vm0, %v822_v17, %v619_v18  ;;  %v823_v35 = vsel %vm479_vm1, %v1617_v23, %v579_v19  ;;  %v495_v19 = vsel %vm479_vm1, %v1572_v14, 0.0  ;;  %v504_v14 = vsel %vm479_vm1, %v1636_v24, 0.0 }
  0xaf   : > { %774 = vrot.lane.b32.xlu0 %v1696_v28, %s1456_s16  ;;  %798 = vrot.lane.b32.xlu1 %v1703_v29, %s1456_s16 }
  0xb1   : > { %v783_v21 = vpop.permute.xlu1 %782  ;;  %v743_v31 = vpop.permute.xlu0 %742 }
  0xb2   : > { %v1798_v32 = vsel %vm889_vm5, %v879_v15, %v783_v21  ;;  %v880_v34 = vsel %vm874_vm4, %v865_v16, %v743_v31  ;;  %v492_v16 = vsel %vm479_vm1, %v1553_v9, 0.0 }
  0xb3   : > { %776 = vrot.lane.b32.xlu0 %v1710_v30, %s1456_s16  ;;  %800 = vrot.lane.b32.xlu1 %v1717_v33, %s1456_s16 }
  0xb5   : > { %v661_v36 = vpop.permute.xlu1 %660  ;;  %v621_v37 = vpop.permute.xlu0 %620 }
  0xb6   : > { %v851_v38 = vsel %vm844_vm2, %v836_v20, %v661_v36  ;;  %v837_v39 = vsel %vm275_vm0, %v823_v35, %v621_v37 }
  0xb9   : > { %v663_v40 = vpop.permute.xlu1 %662  ;;  %v785_v41 = vpop.permute.xlu0 %784 }
  0xba   : > { %v852_v42 = vsel %vm844_vm2, %v837_v39, %v663_v40  ;;  %v1811_v43 = vsel %vm889_vm5, %v880_v34, %v785_v41  ;;  %v501_v34 = vsel %vm479_vm1, %v1617_v23, 0.0  ;;  %v510_v23 = vsel %vm479_vm1, %v1666_v26, 0.0 }
  0xbd   : > { %v581_v44 = vpop.permute.xlu1 %580  ;;  %v703_v45 = vpop.permute.xlu0 %702 }
  0xbe   : > { %v866_v46 = vsel %vm859_vm3, %v851_v38, %v703_v45  ;;  %v824_v51 = vsel %vm479_vm1, %v1636_v24, %v581_v44  ;;  %v507_v38 = vsel %vm479_vm1, %v1647_v25, 0.0  ;;  %v516_v45 = vsel %vm479_vm1, %v1703_v29, 0.0 }
  0xc1   : > { %v745_v47 = vpop.permute.xlu1 %744  ;;  %v705_v48 = vpop.permute.xlu0 %704 }
  0xc2   : > { %v881_v49 = vsel %vm874_vm4, %v866_v46, %v745_v47  ;;  %v867_v50 = vsel %vm859_vm3, %v852_v42, %v705_v48  ;;  %v513_v42 = vsel %vm479_vm1, %v1677_v27, 0.0  ;;  %v519_v48 = vsel %vm479_vm1, %v1717_v33, 0.0 }
  0xc5   : > { %v623_v52 = vpop.permute.xlu1 %622  ;;  %v583_v53 = vpop.permute.xlu0 %582 }
  0xc6   : > { %v838_v54 = vsel %vm275_vm0, %v824_v51, %v623_v52  ;;  %v825_v59 = vsel %vm479_vm1, %v1647_v25, %v583_v53  ;;  %v1906_v53 = vld [vmem:[%s2135_s4] ss:$0 sm:$0xff] }
  0xc9   : > { %v787_v55 = vpop.permute.xlu1 %786  ;;  %v747_v56 = vpop.permute.xlu0 %746 }
  0xca   : > { %v1820_v57 = vsel %vm889_vm5, %v881_v49, %v787_v55  ;;  %v882_v58 = vsel %vm874_vm4, %v867_v50, %v747_v56 }
  0xcd   : > { %v665_v60 = vpop.permute.xlu1 %664  ;;  %v625_v61 = vpop.permute.xlu0 %624 }
  0xce   : > { %v1826_v62 = vsel %vm844_vm2, %v838_v54, %v665_v60  ;;  %v839_v63 = vsel %vm275_vm0, %v825_v59, %v625_v61 }
  0xd1   : > { %v667_v1 = vpop.permute.xlu1 %666  ;;  %v789_v2 = vpop.permute.xlu0 %788 }
  0xd2   : > { %v1832_v4 = vsel %vm844_vm2, %v839_v63, %v667_v1  ;;  %v1835_v5 = vsel %vm889_vm5, %v882_v58, %v789_v2  ;;  %481 = vadd.xlane.f32.xlu0 %v480_v0 }
  0xd5   : > { %v1841_v11 = vpop.permute.xlu1 %584  ;;  %v1843_v12 = vpop.permute.xlu0 %706 }
  0xd6   : > { %487 = vadd.xlane.f32.xlu0 %v486_v8 }
  0xd7   : > { %484 = vadd.xlane.f32.xlu1 %v483_v10 }
  0xd9   : > { %v1851_v17 = vpop.permute.xlu1 %748  ;;  %v1853_v3 = vpop.permute.xlu0 %708 }
  0xda   : > { %490 = vadd.xlane.f32.xlu0 %v489_v13 }
  0xdb   : > { %493 = vadd.xlane.f32.xlu1 %v492_v16 }
  0xdc   : > { %v1847_v15 = vpop.f32.mrf.mxu0 }
  0xdd   : > { %v1863_v21 = vpop.permute.xlu1 %626  ;;  %v1865_v31 = vpop.permute.xlu0 %586 }
  0xde   : > { %v1855_v18 = vpop.f32.mrf.mxu0  ;;  %496 = vadd.xlane.f32.xlu0 %v495_v19 }
  0xdf   : > { %499 = vadd.xlane.f32.xlu1 %v498_v6 }
  0xe0   : > { %v1859_v20 = vpop.f32.mrf.mxu0 }
  0xe1   : > { %v1875_v36 = vpop.permute.xlu1 %790  ;;  %v1877_v37 = vpop.permute.xlu0 %750 }
  0xe2   : > { %v1867_v9 = vpop.f32.mrf.mxu0  ;;  %502 = vadd.xlane.f32.xlu0 %v501_v34 }
  0xe3   : > { %505 = vadd.xlane.f32.xlu1 %v504_v14 }
  0xe4   : > { %v1871_v35 = vpop.f32.mrf.mxu0 }
  0xe5   : > { %v1885_v40 = vpop.permute.xlu1 %668  ;;  %v1887_v41 = vpop.permute.xlu0 %628  ;;  %v422_v14 = vadd.f32 %v1871_v35, %v1906_v53 }
  0xe6   : > { %v1879_v22 = vpop.f32.mrf.mxu0  ;;  %508 = vadd.xlane.f32.xlu0 %v507_v38 }
  0xe7   : > { %511 = vadd.xlane.f32.xlu1 %v510_v23  ;;  %v417_v23 = vadd.f32 %v1906_v53, %v1879_v22  ;;  %v402_v22 = vadd.f32 %v1847_v15, %v1906_v53 }
  0xe8   : > { %v1314_v39 = vpop.f32.mrf.mxu0 }
  0xe9   : > { %v1893_v25 = vpop.permute.xlu1 %670  ;;  %v1895_v46 = vpop.permute.xlu0 %792  ;;  %v432_v16 = vadd.f32 %v1314_v39, %v1906_v53 }
  0xea   : > { %v426_v24 = vpop.f32.mrf.mxu0  ;;  %514 = vadd.xlane.f32.xlu0 %v513_v42 }
  0xeb   : > { %517 = vadd.xlane.f32.xlu1 %v516_v45  ;;  %v427_v34 = vadd.f32 %v1906_v53, %v426_v24  ;;  %v412_v24 = vadd.f32 %v1859_v20, %v1906_v53 }
  0xec   : > { %v1317_v44 = vpop.f32.mrf.mxu0 }
  0xed   : > { %v1899_v50 = vpop.permute.xlu0 %710  ;;  %v1901_v51 = vpop.permute.xlu1 %564  ;;  %v442_v2 = vadd.f32 %v1317_v44, %v1906_v53  ;;  %v407_v44 = vadd.f32 %v1906_v53, %v1867_v9  ;;  %v540_v9 = vld [vmem:[%s2133_s2 + $0x20] sm:$0xff] }
  0xee   : > { %v436_v47 = vpop.f32.mrf.mxu0  ;;  %520 = vadd.xlane.f32.xlu0 %v519_v48  ;;  %v397_v48 = vadd.f32 %v1906_v53, %v1855_v18  ;;  %v542_v18 = vld [vmem:[%s2133_s2 + $0x30] sm:$0xff] }
  0xef   : > { %v437_v13 = vadd.f32 %v1906_v53, %v436_v47  ;;  %v539_v47 = vld [vmem:[%s2133_s2 + $0x18] sm:$0xff] }
  0xf0   : > { %v1320_v49 = vpop.f32.mrf.mxu0  ;;  %v907_v15 = vmul.f32 %v1773_v7, %v539_v47 }
  0xf1   : > { %v1909_v56 = vpop.permute.xlu0 %588  ;;  %v1911_v58 = vpop.permute.xlu1 %712  ;;  %v452_v60 = vadd.f32 %v1320_v49, %v1906_v53 }
  0xf2   : > { %v446_v52 = vpop.f32.mrf.mxu0 }
  0xf3   : > { %v447_v1 = vadd.f32 %v1906_v53, %v446_v52 }
  0xf4   : > { %v1323_v54 = vpop.f32.mrf.mxu0 }
  0xf5   : > { %v462_v55 = vadd.f32 %v1323_v54, %v1906_v53  ;;  %v1915_v63 = vpop.permute.xlu0 %752  ;;  %v1917_v0 = vpop.permute.xlu1 %566  ;;  %v908_v54 = vmul.f32 %v1798_v32, %v540_v9  ;;  %v868_v32 = vsel %vm859_vm3, %v1826_v62, %v1843_v12  ;;  %v544_v62 = vld [vmem:[%s2133_s2 + $0x40] sm:$0xff]  ;;  %v869_v12 = vsel %vm859_vm3, %v1832_v4, %v1853_v3 }
  0xf6   : > { %v456_v59 = vpop.f32.mrf.mxu0 }
  0xf7   : > { %v457_v61 = vadd.f32 %v1906_v53, %v456_v59  ;;  %1324 = vmatprep.subr.mxu0 %v462_v55  ;;  %1373 = vmatprep.subr.mxu1 %v462_v55 }
  0xf8   : > { %1325 = vmatpush3.msra.mxu0 %v462_v55  ;;  %1387 = vmatpush3.msra.mxu1 %v462_v55  ;;  %v541_v55 = vld [vmem:[%s2133_s2 + $0x28] sm:$0xff] }
  0xf9   : > { %1326 = vmatprep.subr.mxu0 %v457_v61  ;;  %1374 = vmatprep.subr.mxu1 %v457_v61  ;;  %v1921_v8 = vpop.permute.xlu0 %590  ;;  %v1923_v10 = vpop.permute.xlu1 %606  ;;  %v909_v7 = vmul.f32 %v1811_v43, %v541_v55 }
  0xfa   : > { %1327 = vmatpush3.msra.mxu0 %v457_v61  ;;  %1388 = vmatpush3.msra.mxu1 %v457_v61  ;;  %v543_v61 = vld [vmem:[%s2133_s2 + $0x38] sm:$0xff] }
  0xfb   : > { %1328 = vmatprep.subr.mxu0 %v452_v60  ;;  %1375 = vmatprep.subr.mxu1 %v452_v60 }
  0xfc   : > { %1329 = vmatpush3.msra.mxu0 %v452_v60  ;;  %1389 = vmatpush3.msra.mxu1 %v452_v60  ;;  %v910_v60 = vmul.f32 %v1820_v57, %v542_v18 }
  0xfd   : > { %1330 = vmatprep.subr.mxu0 %v447_v1  ;;  %1376 = vmatprep.subr.mxu1 %v447_v1  ;;  %v1927_v19 = vpop.permute.xlu0 %630  ;;  %v1929_v6 = vpop.permute.xlu1 %754 }
  0xfe   : > { %1331 = vmatpush3.msra.mxu0 %v447_v1  ;;  %1390 = vmatpush3.msra.mxu1 %v447_v1  ;;  %v826_v1 = vsel %vm479_vm1, %v1666_v26, %v1841_v11  ;;  %v911_v11 = vmul.f32 %v1835_v5, %v543_v61  ;;  %v545_v5 = vld [vmem:[%s2133_s2 + $0x48] sm:$0xff] }
  0xff   : > { %1332 = vmatprep.subr.mxu0 %v442_v2  ;;  %1377 = vmatprep.subr.mxu1 %v442_v2  ;;  %v840_v43 = vsel %vm275_vm0, %v826_v1, %v1863_v21  ;;  %v884_v21 = vsel %vm874_vm4, %v869_v12, %v1877_v37  ;;  %v546_v37 = vld [vmem:[%s2133_s2 + $0x50] sm:$0xff] }
 0x100   : > { %1333 = vmatpush3.msra.mxu0 %v442_v2  ;;  %1391 = vmatpush3.msra.mxu1 %v442_v2  ;;  %v883_v2 = vsel %vm874_vm4, %v868_v32, %v1851_v17  ;;  %v855_v26 = vsel %vm844_vm2, %v840_v43, %v1885_v40  ;;  %v827_v17 = vsel %vm479_vm1, %v1677_v27, %v1865_v31 }
 0x101   : > { %1334 = vmatprep.subr.mxu0 %v437_v13  ;;  %1378 = vmatprep.subr.mxu1 %v437_v13  ;;  %v1934_v38 = vpop.permute.xlu0 %794  ;;  %v1936_v39 = vpop.permute.xlu1 %608  ;;  %v898_v57 = vsel %vm889_vm5, %v883_v2, %v1875_v36  ;;  %v870_v36 = vsel %vm859_vm3, %v855_v26, %v1899_v50  ;;  %v841_v3 = vsel %vm275_vm0, %v827_v17, %v1887_v41 }
 0x102   : > { %1335 = vmatpush3.msra.mxu0 %v437_v13  ;;  %1392 = vmatpush3.msra.mxu1 %v437_v13  ;;  %v912_v4 = vmul.f32 %v898_v57, %v544_v62  ;;  %v899_v40 = vsel %vm889_vm5, %v884_v21, %v1895_v46  ;;  %v885_v27 = vsel %vm874_vm4, %v870_v36, %v1915_v63 }
 0x103   : > { %1336 = vmatprep.subr.mxu0 %v432_v16  ;;  %1379 = vmatprep.subr.mxu1 %v432_v16  ;;  %v856_v31 = vsel %vm844_vm2, %v841_v3, %v1893_v25  ;;  %v900_v41 = vsel %vm889_vm5, %v885_v27, %v1934_v38  ;;  %v913_v46 = vmul.f32 %v899_v40, %v545_v5 }
 0x104   : > { %1337 = vmatpush3.msra.mxu0 %v432_v16  ;;  %1393 = vmatpush3.msra.mxu1 %v432_v16  ;;  %v871_v50 = vsel %vm859_vm3, %v856_v31, %v1911_v58  ;;  %v816_v58 = vsel %vm479_vm1, %v1696_v28, %v1901_v51  ;;  %v536_v51 = vld [vmem:[%s2133_s2] sm:$0xff] }
 0x105   : > { %1338 = vmatprep.subr.mxu0 %v427_v34  ;;  %1380 = vmatprep.subr.mxu1 %v427_v34  ;;  %v1942_v35 = vpop.permute.xlu0 %632  ;;  %v1944_v42 = vpop.permute.xlu1 %648  ;;  %v886_v63 = vsel %vm874_vm4, %v871_v50, %v1929_v6  ;;  %v828_v6 = vsel %vm479_vm1, %v1703_v29, %v1909_v56  ;;  %v830_v47 = vsel %vm275_vm0, %v816_v58, %v1923_v10  ;;  %v548_v56 = vld [vmem:[%s2133_s2 + $0x60] sm:$0xff] }
 0x106   : > { %1339 = vmatpush3.msra.mxu0 %v427_v34  ;;  %1394 = vmatpush3.msra.mxu1 %v427_v34  ;;  %v845_v9 = vsel %vm844_vm2, %v830_v47, %v1944_v42  ;;  %v817_v10 = vsel %vm479_vm1, %v1710_v30, %v1917_v0 }
 0x107   : > { %1340 = vmatprep.subr.mxu0 %v422_v14  ;;  %1381 = vmatprep.subr.mxu1 %v422_v14  ;;  %v831_v55 = vsel %vm275_vm0, %v817_v10, %v1936_v39  ;;  %v537_v39 = vld [vmem:[%s2133_s2 + $0x8] sm:$0xff] }
 0x108   : > { %1341 = vmatpush3.msra.mxu0 %v422_v14  ;;  %1395 = vmatpush3.msra.mxu1 %v422_v14  ;;  %v914_v14 = vmul.f32 %v900_v41, %v546_v37 }
 0x109   : > { %1342 = vmatprep.subr.mxu0 %v417_v23  ;;  %1382 = vmatprep.subr.mxu1 %v417_v23  ;;  %v1950_v20 = vpop.permute.xlu0 %672  ;;  %v797_v45 = vpop.permute.xlu1 %796 }
 0x10a   : > { %1343 = vmatpush3.msra.mxu0 %v417_v23  ;;  %1396 = vmatpush3.msra.mxu1 %v417_v23  ;;  %v547_v23 = vld [vmem:[%s2133_s2 + $0x58] sm:$0xff]  ;;  %v901_v38 = vsel %vm889_vm5, %v886_v63, %v797_v45  ;;  %v842_v45 = vsel %vm275_vm0, %v828_v6, %v1927_v19  ;;  %v829_v19 = vsel %vm479_vm1, %v1717_v33, %v1921_v8 }
 0x10b   : > { %1344 = vmatprep.subr.mxu0 %v412_v24  ;;  %1383 = vmatprep.subr.mxu1 %v412_v24  ;;  %v843_v18 = vsel %vm275_vm0, %v829_v19, %v1942_v35  ;;  %v549_v35 = vld [vmem:[%s2133_s2 + $0x68] sm:$0xff] }
 0x10c   : > { %1345 = vmatpush3.msra.mxu0 %v412_v24  ;;  %1397 = vmatpush3.msra.mxu1 %v412_v24  ;;  %v915_v24 = vmul.f32 %v901_v38, %v547_v23 }
 0x10d   : > { %1346 = vmatprep.subr.mxu0 %v407_v44  ;;  %1384 = vmatprep.subr.mxu1 %v407_v44  ;;  %v1961_v49 = vpop.permute.xlu0 %650  ;;  %v1963_v52 = vpop.permute.xlu1 %674 }
 0x10e   : > { %1347 = vmatpush3.msra.mxu0 %v407_v44  ;;  %1398 = vmatpush3.msra.mxu1 %v407_v44  ;;  %v846_v0 = vsel %vm844_vm2, %v831_v55, %v1961_v49  ;;  %v858_v33 = vsel %vm844_vm2, %v843_v18, %v1963_v52 }
 0x10f   : > { %1348 = vmatprep.subr.mxu0 %v402_v22  ;;  %1385 = vmatprep.subr.mxu1 %v402_v22 }
 0x110   : > { %1349 = vmatpush3.msra.mxu0 %v402_v22  ;;  %1399 = vmatpush3.msra.mxu1 %v402_v22 }
 0x111   : > { %1350 = vmatprep.subr.mxu0 %v397_v48  ;;  %1386 = vmatprep.subr.mxu1 %v397_v48  ;;  %v691_v53 = vpop.permute.xlu0 %690  ;;  %v715_v59 = vpop.permute.xlu1 %714 }
 0x112   : > { %1351 = vmatpush3.msra.mxu0 %v397_v48  ;;  %1400 = vmatpush3.msra.mxu1 %v397_v48  ;;  %v857_v48 = vsel %vm844_vm2, %v842_v45, %v1950_v20  ;;  %v860_v28 = vsel %vm859_vm3, %v845_v9, %v691_v53 }
 0x113   : > { %1356 = vmatmul.mubr.msk.f32.vlgmr.msra.gmra.mxu1 %vm918_vm6, %v907_v15  ;;  %v872_v29 = vsel %vm859_vm3, %v857_v48, %v715_v59 }
 0x114   : > { %1358 = vmatprep.mubr.msk.f32.mxu1 %vm918_vm6, %v908_v54 }
 0x115   : > { %v693_v13 = vpop.permute.xlu0 %692  ;;  %v717_v16 = vpop.permute.xlu1 %716 }
 0x116   : > { %v861_v53 = vsel %vm859_vm3, %v846_v0, %v693_v13  ;;  %v873_v59 = vsel %vm859_vm3, %v858_v33, %v717_v16 }
 0x117   : > { %1359 = vmatmul.mubr.msk.f32.gmra.mxu1 %vm918_vm6, %v909_v7 }
 0x118   : > { %1361 = vmatprep.mubr.msk.f32.mxu1 %vm918_vm6, %v910_v60 }
 0x119   : > { %v733_v34 = vpop.permute.xlu0 %732  ;;  %v757_v25 = vpop.permute.xlu1 %756 }
 0x11a   : > { %v875_v42 = vsel %vm874_vm4, %v860_v28, %v733_v34  ;;  %v887_v20 = vsel %vm874_vm4, %v872_v29, %v757_v25 }
 0x11b   : > { %1362 = vmatmul.mubr.msk.f32.gmra.mxu1 %vm918_vm6, %v911_v11 }
 0x11c   : > { %1364 = vmatprep.mubr.msk.f32.mxu1 %vm918_vm6, %v912_v4 }
 0x11d   : > { %v735_v44 = vpop.permute.xlu0 %734  ;;  %v759_v22 = vpop.permute.xlu1 %758 }
 0x11e   : > { %v876_v60 = vsel %vm874_vm4, %v861_v53, %v735_v44  ;;  %v888_v49 = vsel %vm874_vm4, %v873_v59, %v759_v22 }
 0x11f   : > { %1365 = vmatmul.mubr.msk.f32.gmra.mxu1 %vm918_vm6, %v913_v46 }
 0x120   : > { %1367 = vmatprep.mubr.msk.f32.mxu1 %vm918_vm6, %v914_v14 }
 0x121   : > { %v775_v15 = vpop.permute.xlu0 %774  ;;  %v799_v54 = vpop.permute.xlu1 %798 }
 0x122   : > { %v890_v7 = vsel %vm889_vm5, %v875_v42, %v775_v15  ;;  %v902_v30 = vsel %vm889_vm5, %v887_v20, %v799_v54 }
 0x123   : > { %1368 = vmatmul.mubr.msk.f32.gmra.mxu1 %vm918_vm6, %v915_v24  ;;  %v904_v8 = vmul.f32 %v890_v7, %v536_v51  ;;  %v916_v32 = vmul.f32 %v902_v30, %v548_v56 }
 0x125   : > { %v777_v61 = vpop.permute.xlu0 %776  ;;  %v801_v52 = vpop.permute.xlu1 %800  ;;  %1352 = vmatprep.mubr.msk.f32.mxu0 %vm918_vm6, %v904_v8  ;;  %1370 = vmatprep.mubr.msk.f32.mxu1 %vm918_vm6, %v916_v32 }
 0x126   : > { %v891_v1 = vsel %vm889_vm5, %v876_v60, %v777_v61  ;;  %v903_v2 = vsel %vm889_vm5, %v888_v49, %v801_v52 }
 0x127   : > { %v905_v43 = vmul.f32 %v891_v1, %v537_v39  ;;  %v917_v62 = vmul.f32 %v903_v2, %v549_v35 }
 0x129   : > { %1353 = vmatmul.mubr.msk.f32.vlgmr.msra.gmra.mxu0 %vm918_vm6, %v905_v43  ;;  %1371 = vmatmul.mubr.msk.f32.gmra.mxu1 %vm918_vm6, %v917_v62 }
 0x15b   : > { %v482_v57 = vpop.xlane.xlu0 %481 }
 0x15f   : > { %v488_v12 = vpop.xlane.xlu0 %487 }
 0x160   : > { %v485_v11 = vpop.xlane.xlu1 %484 }
 0x163   : > { %v491_v26 = vpop.xlane.xlu0 %490 }
 0x164   : > { %v494_v21 = vpop.xlane.xlu1 %493  ;;  %1415 = vrcp.f32 %v491_v26 }
 0x165   : > { %1417 = vrcp.f32 %v488_v12 }
 0x167   : > { %v497_v17 = vpop.xlane.xlu0 %496 }
 0x168   : > { %v500_v13 = vpop.xlane.xlu1 %499  ;;  %1419 = vrcp.f32 %v497_v17 }
 0x169   : > { %1421 = vrcp.f32 %v494_v21 }
 0x16b   : > { %v503_v36 = vpop.xlane.xlu0 %502 }
 0x16c   : > { %1423 = vrcp.f32 %v503_v36  ;;  %v506_v4 = vpop.xlane.xlu1 %505 }
 0x16d   : > { %1425 = vrcp.f32 %v500_v13 }
 0x16f   : > { %v509_v16 = vpop.xlane.xlu0 %508 }
 0x170   : > { %1427 = vrcp.f32 %v509_v16  ;;  %v512_v31 = vpop.xlane.xlu1 %511 }
 0x171   : > { %v1416_v3 = vpop.eup %1415  ;;  %1429 = vrcp.f32 %v506_v4 }
 0x172   : > { %v1418_v40 = vpop.eup %1417 }
 0x173   : > { %v515_v5 = vpop.xlane.xlu0 %514 }
 0x174   : > { %1431 = vrcp.f32 %v515_v5  ;;  %v518_v29 = vpop.xlane.xlu1 %517 }
 0x175   : > { %v1420_v41 = vpop.eup %1419  ;;  %1433 = vrcp.f32 %v512_v31 }
 0x176   : > { %v1422_v34 = vpop.eup %1421 }
 0x177   : > { %v521_v47 = vpop.xlane.xlu0 %520 }
 0x178   : > { %1435 = vrcp.f32 %v521_v47 }
 0x179   : > { %v1424_v38 = vpop.eup %1423  ;;  %1437 = vrcp.f32 %v485_v11 }
 0x17a   : > { %v1426_v44 = vpop.eup %1425  ;;  %1439 = vrcp.f32 %v518_v29 }
 0x17b   : > { %1441 = vrcp.f32 %v482_v57 }
 0x17d   : > { %v1428_v48 = vpop.eup %1427 }
 0x17e   : > { %v1430_v10 = vpop.eup %1429 }
 0x181   : > { %v1432_v15 = vpop.eup %1431 }
 0x182   : > { %v1434_v7 = vpop.eup %1433 }
 0x185   : > { %v1436_v39 = vpop.eup %1435 }
 0x186   : > { %v1438_v35 = vpop.eup %1437 }
 0x187   : > { %v1440_v60 = vpop.eup %1439 }
 0x188   : > { %v1442_v2 = vpop.eup %1441 }
 0x1d3   : > { %v1357_v27 = vpop.f32.mrf.mxu1 }
 0x1d4   : > { %v1099_v37 = vmul.f32 %v1416_v3, %v1357_v27 }
 0x1d5   : > { %v1037_v50 = vpop.f32.mrf.mxu1 }
 0x1d6   : > { %v1113_v46 = vmax.f32 %v1099_v37, 0.0  ;;  %v1098_v63 = vmul.f32 %v1418_v40, %v1037_v50 }
 0x1d7   : > { %v1360_v25 = vpop.f32.mrf.mxu1 }
 0x1d8   : > { %1127 = vst.msk [vmem:[%s2098_s28 + $0x18] sm:$0xff] %vm275_vm0, %v1113_v46  ;;  %v1112_v14 = vmax.f32 %v1098_v63, 0.0  ;;  %v1101_v23 = vmul.f32 %v1420_v41, %v1360_v25 }
 0x1d9   : > { %v1047_v58 = vpop.f32.mrf.mxu1 }
 0x1da   : > { %1126 = vst.msk [vmem:[%s2098_s28 + $0x10] sm:$0xff] %vm275_vm0, %v1112_v14  ;;  %v1115_v6 = vmax.f32 %v1101_v23, 0.0  ;;  %v1100_v24 = vmul.f32 %v1422_v34, %v1047_v58 }
 0x1db   : > { %v1363_v22 = vpop.f32.mrf.mxu1 }
 0x1dc   : > { %1129 = vst.msk [vmem:[%s2098_s28 + $0x28] sm:$0xff] %vm275_vm0, %v1115_v6  ;;  %v1114_v45 = vmax.f32 %v1100_v24, 0.0  ;;  %v1103_v9 = vmul.f32 %v1424_v38, %v1363_v22 }
 0x1dd   : > { %v1057_v28 = vpop.f32.mrf.mxu1 }
 0x1de   : > { %1128 = vst.msk [vmem:[%s2098_s28 + $0x20] sm:$0xff] %vm275_vm0, %v1114_v45  ;;  %v1117_v51 = vmax.f32 %v1103_v9, 0.0  ;;  %v1102_v56 = vmul.f32 %v1426_v44, %v1057_v28 }
 0x1df   : > { %v1366_v19 = vpop.f32.mrf.mxu1 }
 0x1e0   : > { %1131 = vst.msk [vmem:[%s2098_s28 + $0x38] sm:$0xff] %vm275_vm0, %v1117_v51  ;;  %v1116_v42 = vmax.f32 %v1102_v56, 0.0  ;;  %v1105_v20 = vmul.f32 %v1428_v48, %v1366_v19 }
 0x1e1   : > { %v1067_v54 = vpop.f32.mrf.mxu1 }
 0x1e2   : > { %1130 = vst.msk [vmem:[%s2098_s28 + $0x30] sm:$0xff] %vm275_vm0, %v1116_v42  ;;  %v1119_v55 = vmax.f32 %v1105_v20, 0.0  ;;  %v1104_v18 = vmul.f32 %v1430_v10, %v1067_v54 }
 0x1e3   : > { %v1369_v30 = vpop.f32.mrf.mxu1 }
 0x1e4   : > { %1133 = vst.msk [vmem:[%s2098_s28 + $0x48] sm:$0xff] %vm275_vm0, %v1119_v55  ;;  %v1118_v0 = vmax.f32 %v1104_v18, 0.0  ;;  %v1107_v33 = vmul.f32 %v1432_v15, %v1369_v30 }
 0x1e5   : > { %v1077_v8 = vpop.f32.mrf.mxu1 }
 0x1e6   : > { %1132 = vst.msk [vmem:[%s2098_s28 + $0x40] sm:$0xff] %vm275_vm0, %v1118_v0  ;;  %v1121_v32 = vmax.f32 %v1107_v33, 0.0  ;;  %v1106_v53 = vmul.f32 %v1434_v7, %v1077_v8 }
 0x1e8   : > { %1135 = vst.msk [vmem:[%s2098_s28 + $0x58] sm:$0xff] %vm275_vm0, %v1121_v32  ;;  %v1120_v59 = vmax.f32 %v1106_v53, 0.0 }
 0x1e9   : > { %v1354_v49 = vpop.f32.mrf.mxu0  ;;  %v1372_v61 = vpop.f32.mrf.mxu1 }
 0x1ea   : > { %1134 = vst.msk [vmem:[%s2098_s28 + $0x50] sm:$0xff] %vm275_vm0, %v1120_v59  ;;  %v1097_v52 = vmul.f32 %v1438_v35, %v1354_v49  ;;  %v1109_v1 = vmul.f32 %v1436_v39, %v1372_v61 }
 0x1eb   : > { %v1027_v43 = vpop.f32.mrf.mxu0  ;;  %v1087_v62 = vpop.f32.mrf.mxu1 }
 0x1ec   : > { %v1111_v57 = vmax.f32 %v1097_v52, 0.0  ;;  %v1123_v12 = vmax.f32 %v1109_v1, 0.0  ;;  %v1096_v26 = vmul.f32 %v1442_v2, %v1027_v43  ;;  %v1108_v11 = vmul.f32 %v1440_v60, %v1087_v62 }
 0x1ee   : > { %1125 = vst.msk [vmem:[%s2098_s28 + $0x8] sm:$0xff] %vm275_vm0, %v1111_v57  ;;  %1137 = vst.msk [vmem:[%s2098_s28 + $0x68] sm:$0xff] %vm275_vm0, %v1123_v12  ;;  %v1110_v17 = vmax.f32 %v1096_v26, 0.0  ;;  %v1122_v21 = vmax.f32 %v1108_v11, 0.0 }
 0x1f0   : > { %1124 = vst.msk [vmem:[%s2098_s28] sm:$0xff] %vm275_vm0, %v1110_v17  ;;  %1136 = vst.msk [vmem:[%s2098_s28 + $0x60] sm:$0xff] %vm275_vm0, %v1122_v21 }
 0x1f1 PF: > { %s15_s18 = sadd.s32 1, %s1449_s18  }
 0x1f2   : > { %p12_p4 = scmp.ge.s32.totalorder %s15_s18, 4  }
 0x1f4   :  { %14 = sbr.rel (!%p12_p4) target bundleno = 1 (0x1), region = 73 }

</bundles_post_ra>
